<compile_context>
chip_gen: v7x
topology: tpu7x:2x2x1
jax: 0.10.0
libtpu: 0.0.40
codegen_flags: <defaults>
</compile_context>

<pallas_src>
import functools

import jax
import jax.numpy as jnp
from jax import lax
from jax.experimental import pallas as pl
from jax.experimental.pallas import tpu as pltpu


def _choose_cblk(C, HW, budget_bytes=64 * 1024):
    """Largest divisor of C whose (cblk, HW) f32 chunk fits the register budget.

    Prefers chunk sizes that are multiples of 8 (sublane aligned) when one exists.
    """
    bytes_per_row = max(1, HW) * 4
    cap = max(1, min(128, budget_bytes // bytes_per_row))
    cap = min(cap, C)
    best = 1
    best_aligned = 0
    for cand in range(1, cap + 1):
        if C % cand == 0:
            best = cand
            if cand % 8 == 0:
                best_aligned = cand
    return best_aligned if best_aligned else best


_UNROLL_LIMIT = 32  # chunk loops with <= this many iterations are fully unrolled


def _eca_kernel(x_ref, w_ref, o_ref, mean_ref, scale_ref, *, C, HW, K, PAD, CBLK):
    # x_ref    : (1, C, HW)       VMEM, one batch element, spatial flattened
    # w_ref    : (K,)             SMEM, flattened Conv1d(1,1,K) weight
    # o_ref    : (1, C, HW)       VMEM output block
    # mean_ref : (C + 2*PAD, 1)   VMEM f32 scratch: per-channel means, zero halo
    # scale_ref: (C, 1)           VMEM f32 scratch: sigmoid channel attention
    inv_hw = 1.0 / float(HW)
    nchunks = C // CBLK

    # Re-zero only the halo rows each grid step (cheap; interior fully overwritten).
    if PAD > 0:
        mean_ref[0:PAD, :] = jnp.zeros((PAD, 1), jnp.float32)
        mean_ref[C + PAD:C + 2 * PAD, :] = jnp.zeros((PAD, 1), jnp.float32)

    def for_each_chunk(body):
        if nchunks <= _UNROLL_LIMIT:
            for i in range(nchunks):            # unrolled, fully static offsets
                body(i * CBLK)
        else:
            def wrapped(i, carry):
                body(pl.multiple_of(i * CBLK, CBLK))
                return carry
            lax.fori_loop(0, nchunks, wrapped, 0)

    # Pass 1: per-channel mean over the spatial (lane) axis, chunked over C.
    def mean_chunk(c0):
        xs = x_ref[0, pl.ds(c0, CBLK), :].astype(jnp.float32)      # (CBLK, HW)
        mean_ref[pl.ds(PAD + c0, CBLK), :] = (
            jnp.sum(xs, axis=-1, keepdims=True) * inv_hw)          # (CBLK, 1)

    for_each_chunk(mean_chunk)

    # K-tap 1D conv over channels (cross-correlation, zero padded) + sigmoid.
    acc = mean_ref[0:C, :] * w_ref[0]
    for j in range(1, K):
        acc = acc + mean_ref[j:j + C, :] * w_ref[j]
    scale_ref[...] = jax.nn.sigmoid(acc)                           # (C, 1)

    # Pass 2: rescale each channel row and write the lane-dense output.
    def scale_chunk(c0):
        xs = x_ref[0, pl.ds(c0, CBLK), :].astype(jnp.float32)      # (CBLK, HW)
        sc = scale_ref[pl.ds(c0, CBLK), :]                         # (CBLK, 1)
        o_ref[0, pl.ds(c0, CBLK), :] = (xs * sc).astype(o_ref.dtype)

    for_each_chunk(scale_chunk)


def eca_forward(x, weight):
    """ECA forward pass. x: (N, C, H, W); weight: (1, 1, K) Conv1d weight."""
    N, C, H, W = x.shape
    HW = H * W
    K = int(weight.shape[-1])
    PAD = (K - 1) // 2
    CBLK = _choose_cblk(C, HW)

    x2 = x.reshape(N, C, HW)                       # lane-dense spatial axis
    w_flat = weight.reshape(-1).astype(jnp.float32)

    kernel = functools.partial(_eca_kernel, C=C, HW=HW, K=K, PAD=PAD, CBLK=CBLK)

    block_bytes = C * HW * jnp.dtype(x.dtype).itemsize
    vmem_limit = int(min(64 * 1024 * 1024, max(8 * 1024 * 1024, 6 * block_bytes)))

    out2 = pl.pallas_call(
        kernel,
        out_shape=jax.ShapeDtypeStruct((N, C, HW), x.dtype),
        grid_spec=pltpu.PrefetchScalarGridSpec(
            num_scalar_prefetch=0,
            grid=(N,),
            in_specs=[
                pl.BlockSpec((1, C, HW), lambda n: (n, 0, 0)),
                pl.BlockSpec(memory_space=pltpu.SMEM),   # whole (K,) weight
            ],
            out_specs=pl.BlockSpec((1, C, HW), lambda n: (n, 0, 0)),
            scratch_shapes=[
                pltpu.VMEM((C + 2 * PAD, 1), jnp.float32),   # padded means
                pltpu.VMEM((C, 1), jnp.float32),             # sigmoid scale
            ],
        ),
        compiler_params=pltpu.CompilerParams(
            dimension_semantics=("parallel",),
            vmem_limit_bytes=vmem_limit,
        ),
    )(x2, w_flat)
    return out2.reshape(N, C, H, W)


def eca_ref(x, weight):
    """Pure-JAX reference matching the PyTorch eca_layer forward."""
    N, C, H, W = x.shape
    K = int(weight.shape[-1])
    pad = (K - 1) // 2
    w = weight.reshape(-1).astype(jnp.float32)
    y = jnp.mean(x.astype(jnp.float32), axis=(2, 3))      # (N, C) global avg pool
    yp = jnp.pad(y, ((0, 0), (pad, pad)))                 # zero pad over channels
    z = sum(w[j] * yp[:, j:j + C] for j in range(K))      # 1D conv (cross-corr)
    scale = jax.nn.sigmoid(z)[:, :, None, None]           # (N, C, 1, 1)
    return (x * scale).astype(x.dtype)


if __name__ == "__main__":
    key = jax.random.PRNGKey(0)
    kx, kw = jax.random.split(key)

    N, C, H, W = 2, 4, 16, 16
    K_SIZE = 3
    x = jax.random.normal(kx, (N, C, H, W), dtype=jnp.float32)
    # nn.Conv1d(1, 1, k_size, bias=False) weight -> shape (1, 1, k_size)
    weight = jax.random.normal(kw, (1, 1, K_SIZE), dtype=jnp.float32) / jnp.sqrt(K_SIZE)

    out = jax.block_until_ready(eca_forward(x, weight))
    ref = eca_ref(x, weight)
    assert out.shape == (N, C, H, W), out.shape
    assert jnp.allclose(out, ref, atol=1e-5, rtol=1e-5), float(jnp.max(jnp.abs(out - ref)))

    # Second check: larger channel count exercises the chunked-C path.
    C2 = 160
    xb = jax.random.normal(kx, (N, C2, H, W), dtype=jnp.float32)
    outb = jax.block_until_ready(eca_forward(xb, weight))
    refb = eca_ref(xb, weight)
    assert jnp.allclose(outb, refb, atol=1e-5, rtol=1e-5), float(jnp.max(jnp.abs(outb - refb)))

    print("KERNEL_OK")
</pallas_src>

<mosaic_0001>
module attributes {stable_mosaic.version = 11 : i64} {
  func.func @_eca_kernel(%arg0: i32, %arg1: memref<1x4x256xf32, #tpu.memory_space<vmem>>, %arg2: memref<3xf32, #tpu.memory_space<smem>>, %arg3: memref<1x4x256xf32, #tpu.memory_space<vmem>>, %arg4: memref<6x1xf32, #tpu.memory_space<vmem>>, %arg5: memref<4x1xf32, #tpu.memory_space<vmem>>) attributes {dimension_semantics = [#tpu.dimension_semantics<parallel>], iteration_bounds = array<i64: 2>, scalar_prefetch = 0 : i64, scratch_operands = 2 : i64, tpu.core_type = #tpu.core_type<tc>, window_params = [{transform_indices = @transform_0, window_bounds = array<i64: 1, 4, 256>}, {transform_indices = @transform_1, window_bounds = array<i64: 3>}, {transform_indices = @transform_2, window_bounds = array<i64: 1, 4, 256>}]} {
    %cst = arith.constant 0.000000e+00 : f32
    %0 = vector.broadcast %cst : f32 to vector<1x1xf32>
    %c0 = arith.constant 0 : index
    %c0_0 = arith.constant 0 : index
    %1 = vector.load %arg4[%c0, %c0_0] : memref<6x1xf32, #tpu.memory_space<vmem>>, vector<1x1xf32>
    tpu.vector_store %arg4[%c0, %c0_0], %0 {strides = array<i32>} : memref<6x1xf32, #tpu.memory_space<vmem>>, vector<1x1xf32>,
    %cst_1 = arith.constant 0.000000e+00 : f32
    %2 = vector.broadcast %cst_1 : f32 to vector<1x1xf32>
    %c5 = arith.constant 5 : index
    %c0_2 = arith.constant 0 : index
    %3 = vector.load %arg4[%c5, %c0_2] : memref<6x1xf32, #tpu.memory_space<vmem>>, vector<1x1xf32>
    tpu.vector_store %arg4[%c5, %c0_2], %2 {strides = array<i32>} : memref<6x1xf32, #tpu.memory_space<vmem>>, vector<1x1xf32>,
    %c0_3 = arith.constant 0 : index
    %c0_4 = arith.constant 0 : index
    %c0_5 = arith.constant 0 : index
    %4 = vector.load %arg1[%c0_3, %c0_4, %c0_5] : memref<1x4x256xf32, #tpu.memory_space<vmem>>, vector<1x4x256xf32>
    %5 = vector.shape_cast %4 : vector<1x4x256xf32> to vector<4x256xf32>
    %cst_6 = arith.constant dense<0.000000e+00> : vector<4xf32>
    %6 = vector.multi_reduction <add>, %5, %cst_6 [1] : vector<4x256xf32> to vector<4xf32>
    %7 = vector.shape_cast %6 : vector<4xf32> to vector<4x1xf32>
    %cst_7 = arith.constant 3.906250e-03 : f32
    %8 = vector.broadcast %cst_7 : f32 to vector<4x1xf32>
    %9 = arith.mulf %7, %8 : vector<4x1xf32>
    %c1 = arith.constant 1 : index
    %c0_8 = arith.constant 0 : index
    %10 = vector.load %arg4[%c1, %c0_8] : memref<6x1xf32, #tpu.memory_space<vmem>>, vector<4x1xf32>
    tpu.vector_store %arg4[%c1, %c0_8], %9 {strides = array<i32>} : memref<6x1xf32, #tpu.memory_space<vmem>>, vector<4x1xf32>,
    %c0_9 = arith.constant 0 : index
    %c0_10 = arith.constant 0 : index
    %11 = vector.load %arg4[%c0_9, %c0_10] : memref<6x1xf32, #tpu.memory_space<vmem>>, vector<4x1xf32>
    %c0_11 = arith.constant 0 : index
    %12 = memref.load %arg2[%c0_11] : memref<3xf32, #tpu.memory_space<smem>>
    %13 = vector.broadcast %12 : f32 to vector<4x1xf32>
    %14 = arith.mulf %11, %13 : vector<4x1xf32>
    %c1_12 = arith.constant 1 : index
    %c0_13 = arith.constant 0 : index
    %15 = vector.load %arg4[%c1_12, %c0_13] : memref<6x1xf32, #tpu.memory_space<vmem>>, vector<4x1xf32>
    %c1_14 = arith.constant 1 : index
    %16 = memref.load %arg2[%c1_14] : memref<3xf32, #tpu.memory_space<smem>>
    %17 = vector.broadcast %16 : f32 to vector<4x1xf32>
    %18 = arith.mulf %15, %17 : vector<4x1xf32>
    %19 = arith.addf %14, %18 : vector<4x1xf32>
    %c2 = arith.constant 2 : index
    %c0_15 = arith.constant 0 : index
    %20 = vector.load %arg4[%c2, %c0_15] : memref<6x1xf32, #tpu.memory_space<vmem>>, vector<4x1xf32>
    %c2_16 = arith.constant 2 : index
    %21 = memref.load %arg2[%c2_16] : memref<3xf32, #tpu.memory_space<smem>>
    %22 = vector.broadcast %21 : f32 to vector<4x1xf32>
    %23 = arith.mulf %20, %22 : vector<4x1xf32>
    %24 = arith.addf %19, %23 : vector<4x1xf32>
    %25 = arith.negf %24 : vector<4x1xf32>
    %26 = math.exp %25 : vector<4x1xf32>
    %cst_17 = arith.constant 1.000000e+00 : f32
    %27 = vector.broadcast %cst_17 : f32 to vector<4x1xf32>
    %28 = arith.addf %27, %26 : vector<4x1xf32>
    %29 = arith.divf %27, %28 : vector<4x1xf32>
    %c0_18 = arith.constant 0 : index
    %c0_19 = arith.constant 0 : index
    %30 = vector.load %arg5[%c0_18, %c0_19] : memref<4x1xf32, #tpu.memory_space<vmem>>, vector<4x1xf32>
    tpu.vector_store %arg5[%c0_18, %c0_19], %29 {strides = array<i32>} : memref<4x1xf32, #tpu.memory_space<vmem>>, vector<4x1xf32>,
    %c0_20 = arith.constant 0 : index
    %c0_21 = arith.constant 0 : index
    %c0_22 = arith.constant 0 : index
    %31 = vector.load %arg1[%c0_20, %c0_21, %c0_22] : memref<1x4x256xf32, #tpu.memory_space<vmem>>, vector<1x4x256xf32>
    %32 = vector.shape_cast %31 : vector<1x4x256xf32> to vector<4x256xf32>
    %c0_23 = arith.constant 0 : index
    %c0_24 = arith.constant 0 : index
    %33 = vector.load %arg5[%c0_23, %c0_24] : memref<4x1xf32, #tpu.memory_space<vmem>>, vector<4x1xf32>
    %34 = vector.broadcast %33 : vector<4x1xf32> to vector<4x256xf32>
    %35 = arith.mulf %32, %34 : vector<4x256xf32>
    %c0_25 = arith.constant 0 : index
    %c0_26 = arith.constant 0 : index
    %c0_27 = arith.constant 0 : index
    %36 = vector.load %arg3[%c0_25, %c0_26, %c0_27] : memref<1x4x256xf32, #tpu.memory_space<vmem>>, vector<1x4x256xf32>
    %37 = vector.shape_cast %36 : vector<1x4x256xf32> to vector<4x256xf32>
    %38 = vector.shape_cast %35 : vector<4x256xf32> to vector<1x4x256xf32>
    tpu.vector_store %arg3[%c0_25, %c0_26, %c0_27], %38 {strides = array<i32>} : memref<1x4x256xf32, #tpu.memory_space<vmem>>, vector<1x4x256xf32>,
    return
  }
  func.func @transform_0(%arg0: i32) -> (i32, i32, i32) {
    %c0_i32 = arith.constant 0 : i32
    %c0_i32_0 = arith.constant 0 : i32
    %c0_i32_1 = arith.constant 0 : i32
    return %arg0, %c0_i32, %c0_i32_0 : i32, i32, i32
  }
  func.func @transform_1(%arg0: i32) -> i32 {
    %c0_i32 = arith.constant 0 : i32
    %c0_i32_0 = arith.constant 0 : i32
    return %c0_i32 : i32
  }
  func.func @transform_2(%arg0: i32) -> (i32, i32, i32) {
    %c0_i32 = arith.constant 0 : i32
    %c0_i32_0 = arith.constant 0 : i32
    %c0_i32_1 = arith.constant 0 : i32
    return %arg0, %c0_i32, %c0_i32_0 : i32, i32, i32
  }
}

</mosaic_0001>

<bundles_post_ra>
// kernel: tpu_custom_call.1
= control target key start
LH: loop header
LB: loop body
LE: loop exit
PB: predicated region body
PF: predicated region fallthrough
CT: control target
= control target key end

     0   :  { %7 = vsyncpa [#allocation5], 0  ;;  %s747_s0 = inlined_call_operand.hbm [shape: f32[2,4,256], index: 0, kind: input, shape index: {}]   ;;  %s748_s1 = inlined_call_operand.vmem [shape: f32[3], index: 1, kind: input, shape index: {}]   ;;  %s749_s2 = inlined_call_operand.hbm [shape: f32[2,4,256], index: 2, kind: output, shape index: {}]  }
   0x1   :  { %9 = vsyncpa [#allocation5 + $0x1], 0 }
   0x2   :  { %10 = vsyncpa [#allocation7], 0 }
   0x3   :  { %11 = vsyncpa [#allocation6], 0 }
   0x4   :  { %13 = vsyncpa [#allocation6 + $0x1], 0  ;;  %s549_s9 = smov 0   ;;  %s551_s10 = smov 0  }
   0x5   :  { %s553_s11 = smov 0   ;;  %s555_s12 = smov 0  }
   0x6 LB: > { %s570_s13 = sadd.s32 4294967295, %s526_s12   ;;  %s324_s14 = sadd.s32 4294967294, %s526_s12   ;;  %s526_s12 = sphi %s555_s12, %s770_s12   ;;  %s522_s11 = sphi %s553_s11, %s769_s11   ;;  %s518_s10 = sphi %s551_s10, %s768_s10   ;;  %s514_s9 = sphi %s549_s9, %s767_s9  }
   0x7   : > { %p39_p0 = scmp.ne.s32.totalorder %s518_s10, %s514_s9  ;;  %p750_p1 = scmp.eq.s32.totalorder %s570_s13, 0 }
   0x8   : > { %p90_p3 = scmp.eq.s32.totalorder %s324_s14, 1  ;;  %p325_p5 = scmp.ge.s32.totalorder %s526_s12, 1 }
   0x9   : > { %p579_p4 = por %p750_p1, %p39_p0  ;;  %p97_p7 = scmp.lt.s32.totalorder %s526_s12, 3 }
   0xa   : > { %p584_p6 = por %p90_p3, %p39_p0  ;;  %s110_s19 = sshll.u32 %s748_s1, 4  ;;  %s111_s19 = int_to_ptr.vmem [resolvable:$true] %s110_s19 }
   0xb   : > { %s753_s15 = scalar_select %p579_p4, 1, 0 }
   0xc   : > { %s754_s16 = scalar_select %p584_p6, 1, 0 }
   0xd   : > { %p592_p8 = pnand %p325_p5, %p97_p7  ;;  %s600_s21 = sadd.s32 1, %s526_s12  }
   0xe   : > { %s23_s23 = ssub.s32 %s526_s12, %s600_s21  ;;  %s26_s25 = sadd.s32 1, %s522_s11 }
   0xf   : > { %p353_p10 = pneg %p592_p8  ;;  %p610_p12 = scmp.eq.s32.totalorder %s23_s23, 0 }
  0x10   : > { %p33_p13 = scmp.ne.s32.totalorder %s522_s11, %s518_s10  ;;  %s411_s26 = scalar_lea.vmem %s111_s19, 16 }
  0x11   : > { %p604_p11 = pnand %p353_p10, %p750_p1  ;;  %p412_p0 = scmp.ne.s32.totalorder %s111_s19, %s411_s26 }
  0x12   : > { %p419_p9 = scmp.lt.s32.totalorder %s111_s19, %s111_s19  ;;  %p420_p2 = scmp.lt.s32.totalorder %s411_s26, %s411_s26 }
  0x13   : > { %p413_p3 = pneg %p604_p11 }
  0x14   : > { %p421_p10 = por %p420_p2, %p419_p9 }
  0x15   : > { %p414_p5 = pnand %p413_p3, %p412_p0 }
  0x17   : > { %p415_p7 = pneg %p414_p5 }
  0x19   : > { %p422_p1 = pnand %p421_p10, %p415_p7 }
  0x1b   : > { %425 = shalt.err (!%p422_p1)
}
  0x1c   : > { %s528_s27 = smov [#allocation8]   ;;  %p34_p2 = scmp.eq.s32.totalorder %s526_s12, 0 }
  0x1d   : > { %356 = dma.vmem_to_smem (!%p604_p11), %s111_s19, 16, %s528_s27, [#allocation7]  }
  0x1e   : > { %s624_s28 = scalar_select %p610_p12, %s522_s11, %s26_s25  }
  0x1f   : > { %p758_p1 = scmp.eq.s32.totalorder %s570_s13, 1  ;;  %p366_p0 = scmp.lt.s32.totalorder %s526_s12, 2 }
  0x20   : > { %s121_s30 = sand.u32 1, %s522_s11   ;;  %p35_p3 = por %p34_p2, %p33_p13 }
  0x21   : > { %p632_p9 = por %p758_p1, %p33_p13  ;;  %s328_s3 = sshll.u32 %s121_s30, 3 }
  0x22   : > { %s343_s4 = sshll.u32 %s526_s12, 7  ;;  %s125_s8 = scalar_lea.vmem [#allocation4], %s328_s3 }
  0x23   : > { %s759_s29 = scalar_select %p632_p9, 1, 0 }
  0x24   : > { %s645_s7 = scalar_lea.hbm %s747_s0, %s343_s4  ;;  %s133_s14 = sshll.u32 %s125_s8, 4  ;;  %s651_s14 = int_to_ptr.vmem [resolvable:$true] %s133_s14 }
  0x25   : > { %p647_p11 = pnand %p366_p0, %p35_p3  ;;  %s122_s18 = scalar_lea.sflag [#allocation5], %s121_s30 }
  0x26   : > { %s426_s19 = scalar_lea.hbm %s645_s7, 128  ;;  %s431_s24 = scalar_lea.hbm %s747_s0, 256 }
  0x27   : > { %p427_p12 = scmp.ne.s32.totalorder %s645_s7, %s426_s19  ;;  %p428_p13 = pneg %p647_p11 }
  0x28   : > { %p432_p10 = scmp.lt.u32.totalorder %s645_s7, %s747_s0  ;;  %p433_p2 = scmp.lt.u32.totalorder %s431_s24, %s426_s19 }
  0x29   : > { %p429_p5 = pnand %p428_p13, %p427_p12  ;;  %p435_p0 = scmp.lt.u32.totalorder %s426_s19, %s645_s7 }
  0x2a   : > { %p434_p1 = por %p433_p2, %p432_p10 }
  0x2b   : > { %p430_p7 = pneg %p429_p5 }
  0x2c   : > { %p436_p3 = por %p435_p0, %p434_p1 }
  0x2e   : > { %p437_p6 = pnand %p436_p3, %p430_p7 }
  0x30   : > { %440 = shalt.err (!%p437_p6)
}
  0x31   : > { %s441_s27 = scalar_lea.vmem %s651_s14, 128  ;;  %s529_s30 = smov [#allocation4]  }
  0x32   : > { %p442_p12 = scmp.ne.s32.totalorder %s651_s14, %s441_s27  ;;  %s446_s3 = sshll.u32 %s529_s30, 4  ;;  %s447_s3 = int_to_ptr.vmem [resolvable:$false] %s446_s3 }
  0x33   : > { %s448_s4 = scalar_lea.vmem %s447_s3, 256  ;;  %p449_p4 = scmp.lt.s32.totalorder %s651_s14, %s447_s3 }
  0x34   : > { %p444_p5 = pnand %p442_p12, %p428_p13  ;;  %p450_p10 = scmp.lt.s32.totalorder %s448_s4, %s441_s27 }
  0x36   : > { %p445_p9 = pneg %p444_p5  ;;  %p451_p2 = por %p450_p10, %p449_p4 }
  0x38   : > { %p452_p1 = pnand %p451_p2, %p445_p9 }
  0x3a   : > { %455 = shalt.err (!%p452_p1)
}
  0x3b   : > { %360 = dma.hbm_to_vmem [thread:$0]  (!%p647_p11), %s645_s7, 128, %s651_s14, %s122_s18  }
  0x3c   : > { %142 = sbr.rel (%p592_p8) target bundleno = 419 (0x1a3), region = 28  ;;  %s681_s5 = sand.u32 (!%p592_p8), 1, %s518_s10  }
  0x3d   : > { %s332_s6 = sshll.u32 (!%p592_p8), %s681_s5, 3  ;;  %s145_s8 = scalar_lea.sflag (!%p592_p8), [#allocation5], %s681_s5 }
  0x3e   : > { %s148_s19 = scalar_lea.vmem (!%p592_p8), [#allocation4], %s332_s6  ;;  %p761_p4 = scmp.ne.s32.totalorder (!%p592_p8), %s753_s15, 0 }
  0x43   : > { %501 = dma.done.wait (%p761_p4), %s145_s8, 128  }
  0x44   : > { %503 = vsyncadd (%p761_p4), %s145_s8, 4294967168  ;;  %p762_p6 = scmp.eq.s32.totalorder %s570_s13, 0 }
  0x46   : > { %505 = dma.done.wait (%p762_p6), [#allocation7], 16   ;;  %p763_p8 = pmov %p762_p6 }
  0x48   : > { %507 = vsyncadd (%p763_p8), [#allocation7], 4294967280 }
  0x49   : > { %157 = sfence }
  0x4a   : > { %v177_v0 = vld [vmem:[%s148_s19] sm:$0xff]  ;;  %vm181_vm0 = vcmask 1043456   ;;  %vm174_vm1 = vcmask 0   ;;  %v530_v5 = vmov 0.0   ;;  %v531_v6 = vmov 0   ;;  %s191_s15 = sld [smem:[#allocation8]] }
  0x4b   : > { %v179_v1 = vcombine.high %v177_v0, %v177_v0  ;;  %v182_v2 = vsel %vm181_vm0, %v177_v0, 0.0  ;;  %175 = vst.msk [vmem:[#allocation2] sm:$0x1] %vm174_vm1, %v530_v5  ;;  %176 = vst.msk [vmem:[#allocation2 + $0x5] sm:$0x1] %vm174_vm1, %v530_v5  ;;  %405 = vset.pattern.permute.xlu0 %v531_v6  ;;  %vm188_vm2 = vcmask 3072   ;;  %v220_v27 = vlaneseq }
  0x4c   : > { %s335_s20 = sld [smem:[#allocation8 + $0x1]]  ;;  %s336_s7 = sld [smem:[#allocation8 + $0x2]]  ;;  %v532_v25 = vmov 839922192  }
  0x4d   : > { %v183_v3 = vsel %vm181_vm0, %v179_v1, 0.0  ;;  %v218_v26 = vunpack.c.l.s4 %v532_v25  ;;  %v221_v29 = vshrl.u32 %v220_v27, 7  ;;  %s344_s14 = sshll.u32 %s570_s13, 7  ;;  %s173_s17 = scalar_lea.vmem [#allocation9], %s332_s6 }
  0x4e   : > { %v184_v4 = vadd.f32 %v183_v3, %v182_v2  ;;  %s242_s18 = sshll.u32 %s173_s17, 4  ;;  %s703_s24 = scalar_lea.hbm %s749_s2, %s344_s14  ;;  %s705_s18 = int_to_ptr.vmem [resolvable:$true] %s242_s18 }
  0x4f   : > { %v219_v28 = vunpack.c.0.s8 %v218_v26  ;;  %s228_s25 = scalar_lea.sflag [#allocation6], %s681_s5  ;;  %s456_s26 = scalar_lea.vmem %s705_s18, 128 }
  0x50   : > { %185 = vadd.xlane.f32.xlu0 %v184_v4  ;;  %v192_v9 = vstv %s191_s15  ;;  %p457_p9 = scmp.ne.s32.totalorder %s705_s18, %s456_s26  ;;  %p764_p11 = scmp.ne.s32.totalorder %s759_s29, 0 }
  0x51   : > { %v222_v30 = vsub.s32 %v219_v28, %v221_v29  ;;  %s533_s13 = smov [#allocation9]  }
  0x52   : > { %v196_v10 = vstv %s335_s20  ;;  %v201_v11 = vstv %s336_s7  ;;  %p458_p13 = pnand %p457_p9, %p764_p11  ;;  %s460_s27 = sshll.u32 %s533_s13, 4  ;;  %s461_s27 = int_to_ptr.vmem [resolvable:$false] %s460_s27 }
  0x53   : > { %s462_s30 = scalar_lea.vmem %s461_s27, 256  ;;  %p463_p0 = scmp.lt.s32.totalorder %s705_s18, %s461_s27 }
  0x54   : > { %p459_p7 = pneg %p458_p13  ;;  %p464_p3 = scmp.lt.s32.totalorder %s462_s30, %s456_s26 }
  0x56   : > { %p465_p12 = por %p464_p3, %p463_p0 }
  0x58   : > { %p466_p5 = pnand %p465_p12, %p459_p7 }
  0xdd   : > { %v186_v7 = vpop.xlane.xlu0 %185 }
  0xde   : > { %v187_v8 = vmul.f32 0.00390625, %v186_v7 }
  0xe0   : > { %189 = vst.msk [vmem:[#allocation2 + $0x1] sm:$0xf] %vm188_vm2, %v187_v8 }
  0xe7   : > { %v190_v12 = vld [vmem:[#allocation2] sm:$0xf] }
  0xe8   : > { %v194_v13 = vld [vmem:[#allocation2 + $0x1] sm:$0xf]  ;;  %v193_v15 = vmul.f32 %v192_v9, %v190_v12 }
  0xe9   : > { %v199_v14 = vld [vmem:[#allocation2 + $0x2] sm:$0xf]  ;;  %v197_v16 = vmul.f32 %v196_v10, %v194_v13 }
  0xea   : > { %v202_v18 = vmul.f32 %v201_v11, %v199_v14 }
  0xeb   : > { %v198_v17 = vadd.f32 %v197_v16, %v193_v15 }
  0xed   : > { %v203_v19 = vadd.f32 %v202_v18, %v198_v17 }
  0xef   : > { %v337_v20 = vmul.f32 -1.442695, %v203_v19 }
  0xf1   : > { %407 = vpow2.f32 %v337_v20 }
  0xfb   : > { %v408_v21 = vpop.eup %407 }
  0xfc   : > { %v207_v22 = vadd.f32 1.0, %v408_v21 }
  0xfe   : > { %409 = vrcp.f32 %v207_v22 }
 0x108   : > { %v410_v23 = vpop.eup %409 }
 0x109   : > { %210 = vst.msk [vmem:[#allocation3] sm:$0xf] %vm188_vm2, %v410_v23 }
 0x110   : > { %v212_v24 = vld [vmem:[#allocation3] sm:$0xf] }
 0x111   : > { %215 = vperm.xlu0 %405, %v212_v24  }
 0x190   : > { %v216_v31 = vpop.permute.xlu0 %215 }
 0x191   : > { %v223_v32 = vrot.slane %v216_v31, %v222_v30 }
 0x193   : > { %v225_v33 = vmul.f32 %v223_v32, %v177_v0 }
 0x195   : > { %226 = vst [vmem:[%s173_s17] sm:$0xff] %v225_v33 }
 0x196   : > { %469 = shalt.err (!%p466_p5)
}
 0x197   : > { %s470_s3 = scalar_lea.hbm %s703_s24, 128  ;;  %s474_s6 = scalar_lea.hbm %s749_s2, 256 }
 0x198   : > { %p471_p10 = scmp.ne.s32.totalorder %s703_s24, %s470_s3  ;;  %p475_p4 = scmp.lt.u32.totalorder %s703_s24, %s749_s2 }
 0x199   : > { %p476_p6 = scmp.lt.u32.totalorder %s474_s6, %s470_s3  ;;  %p478_p9 = scmp.lt.u32.totalorder %s470_s3, %s703_s24 }
 0x19a   : > { %p472_p2 = pnand %p471_p10, %p764_p11 }
 0x19b   : > { %p477_p8 = por %p476_p6, %p475_p4 }
 0x19c   : > { %p473_p1 = pneg %p472_p2 }
 0x19d   : > { %p479_p13 = por %p478_p9, %p477_p8 }
 0x19f   : > { %p480_p7 = pnand %p479_p13, %p473_p1 }
 0x1a1   : > { %483 = shalt.err (!%p480_p7)
}
 0x1a2   : > { %351 = dma.vmem_to_hbm [thread:$0]  (%p764_p11), %s705_s18, 128, %s703_s24, %s228_s25  }
 0x1a3 PF: > { %s254_s15 = sand.u32 1, %s514_s9   ;;  %p765_p0 = scmp.ne.s32.totalorder %s754_s16, 0 }
 0x1a4   : > { %p766_p3 = scmp.ge.s32.totalorder %s526_s12, 2  ;;  %s255_s20 = scalar_lea.sflag [#allocation6], %s254_s15 }
 0x1a6   : > { %p362_p12 = pnand %p766_p3, %p765_p0 }
 0x1a8   : > { %509 = dma.done.wait (!%p362_p12), %s255_s20, 128  }
 0x1a9   : > { %511 = vsyncadd (!%p362_p12), %s255_s20, 4294967168  ;;  %p16_p5 = scmp.ge.s32.totalorder %s600_s21, 4   ;;  %s767_s9 = smov %s518_s10 }
 0x1aa   : > { %s768_s10 = smov %s522_s11  ;;  %s769_s11 = smov %s624_s28 }
 0x1ab   : > { %s770_s12 = smov %s600_s21  ;;  %18 = sbr.rel (!%p16_p5) target bundleno = 6 (0x6), region = 78 }
 0x1b2   :  { %260 = vsyncpa [#allocation5], 1 }
 0x1b3   :  { %262 = vsyncpa [#allocation5 + $0x1], 1 }
 0x1b4   :  { %263 = vsyncpa [#allocation6], 1 }
 0x1b5   :  { %265 = vsyncpa [#allocation6 + $0x1], 1 }
 0x1b6   :  { %266 = vsyncpa [#allocation7], 1 }
 0x1b7   :  { %268 = vsyncpa [#allocation7 + $0x1], 1 }

</bundles_post_ra>
